<compile_context>
chip_gen: v5e
topology: v5e:2x2
jax: 0.10.0
libtpu: 0.0.40
codegen_flags: <defaults>
</compile_context>

<pallas_src>
import jax
import jax.numpy as jnp
from jax.experimental import pallas as pl
from jax.experimental.pallas import tpu as pltpu

# ----------------------------- problem sizes --------------------------------
N = 2              # batch
CIN = 2            # input_channel
H, W = 40, 24      # input spatial (H >= 32 required by the (32,1) conv)
F1, D = 4, 2
C1 = F1 * D        # 8  (block1 / depthwise channels)
F2 = 8             # pointwise output channels
NCLS = 4           # num_classes
KH = 32            # block1 temporal kernel
KW = 16            # block2 depthwise kernel
HOUT1 = H - (KH - 1)          # 9
HP = 16                       # HOUT1 padded to a sublane-aligned block
WPAD = W + 3 + 4              # 31
WOUT2 = WPAD - (KW - 1)       # 16
FF = F2 * HOUT1 * WOUT2       # 1152 flattened features -> fc1
CW = F2 * WOUT2               # 128  (lane-dense inner width)
XROWS = CIN * H + 1           # 81   (x flattened over (C,H) + ones row)
EPS = 1e-5


# ------------------------------ fused kernel ---------------------------------
def fused_kernel(x_ref, m1_ref, k2_ref, c2_ref, wfc_ref, bfc_ref, out_ref,
                 y1_scr, y2_scr, z2_scr):
    """Entire Conv_PSI forward for the whole batch: exactly 3 MXU matmuls."""
    # ---- block1: BN0 + grouped conv(32,1) as one (128,81)@(81,48) matmul ----
    y1 = jnp.dot(m1_ref[...], x_ref[...], preferred_element_type=jnp.float32)
    y1_scr[...] = jnp.maximum(y1, 0.0)                 # ReLU (Dropout = identity)

    # ---- relayout (c,h) x (n,w)  ->  (n,h) x (c,w)  via static VMEM copies ----
    for n in range(N):
        for c in range(C1):
            y2_scr[n * HP:(n + 1) * HP, c * W:(c + 1) * W] = \
                y1_scr[c * HP:(c + 1) * HP, n * W:(n + 1) * W]

    # ---- block2: pad + depthwise(1,16) + pointwise 1x1 (BN1 folded) ----------
    y2 = y2_scr[...].astype(jnp.bfloat16)              # (N*HP, C1*W) = (32, 192)
    acc = jnp.dot(y2, k2_ref[...], preferred_element_type=jnp.float32)   # (32, 128)
    z = jnp.maximum(acc + c2_ref[...], 0.0)            # + BN1-shift, ReLU (f32)

    # ---- relayout rows (n,h) -> lanes (h*CW+j) for the fc --------------------
    for n in range(N):
        for h in range(HOUT1):                         # padded h-rows are dropped here
            z2_scr[n:n + 1, h * CW:(h + 1) * CW] = z[n * HP + h:n * HP + h + 1, :]

    # ---- fc1 with BN2 folded: one (N, 1152)@(1152, NCLS) matmul --------------
    zf = z2_scr[...].astype(jnp.bfloat16)
    out_ref[...] = (jnp.dot(zf, wfc_ref[...], preferred_element_type=jnp.float32)
                    + bfc_ref[...])


# ------------------------------- wrapper -------------------------------------
def conv_psi_forward(x, kp):
    # (N, CIN, H, W) -> (XROWS, N*W): flatten (C,H), append a ones row (carries
    # the BN0 shift through the matmul), fold batch into lanes, cast to bf16.
    x3 = jnp.concatenate(
        [x.reshape(N, CIN * H, W), jnp.ones((N, 1, W), jnp.float32)], axis=1)
    x_all = jnp.transpose(x3, (1, 0, 2)).reshape(XROWS, N * W).astype(jnp.bfloat16)

    out = pl.pallas_call(
        fused_kernel,
        out_shape=jax.ShapeDtypeStruct((N, NCLS), jnp.float32),
        grid=(1,),                                    # whole batch in one step
        in_specs=[
            pl.BlockSpec((XROWS, N * W), lambda i: (0, 0)),       # x_all
            pl.BlockSpec((C1 * HP, XROWS), lambda i: (0, 0)),     # m1 (banded, padded)
            pl.BlockSpec((C1 * W, CW), lambda i: (0, 0)),         # k2
            pl.BlockSpec((1, CW), lambda i: (0, 0)),              # c2 (BN1 shift)
            pl.BlockSpec((HOUT1 * CW, NCLS), lambda i: (0, 0)),   # wfc (BN2 folded)
            pl.BlockSpec((1, NCLS), lambda i: (0, 0)),            # effective fc bias
        ],
        out_specs=pl.BlockSpec((N, NCLS), lambda i: (0, 0)),
        scratch_shapes=[
            pltpu.VMEM((C1 * HP, N * W), jnp.float32),            # y1 (block1 out)
            pltpu.VMEM((N * HP, C1 * W), jnp.float32),            # y2 (relayout #1)
            pltpu.VMEM((N, HOUT1 * CW), jnp.float32),             # z  (relayout #2)
        ],
        compiler_params=pltpu.CompilerParams(
            dimension_semantics=("arbitrary",)),
    )(x_all, kp["m1"], kp["k2"], kp["c2"], kp["wfc"], kp["bfc_eff"])
    return out


# --------------------------- param construction ------------------------------
def make_raw_params(key):
    ks = jax.random.split(key, 8)

    def bn_params(k, c):
        k1, k2, k3, k4 = jax.random.split(k, 4)
        gamma = 1.0 + 0.1 * jax.random.normal(k1, (c,), jnp.float32)
        beta = 0.1 * jax.random.normal(k2, (c,), jnp.float32)
        mean = 0.1 * jax.random.normal(k3, (c,), jnp.float32)
        var = jnp.abs(jax.random.normal(k4, (c,), jnp.float32)) + 0.5
        return gamma, beta, mean, var

    raw = {
        "bn0": bn_params(ks[0], CIN),
        "bn1": bn_params(ks[1], C1),
        "bn2": bn_params(ks[2], F2),
        "w1": 0.1 * jax.random.normal(ks[3], (C1, 1, KH, 1), jnp.float32),   # grouped
        "w2": 0.1 * jax.random.normal(ks[4], (C1, 1, 1, KW), jnp.float32),   # depthwise
        "wp": 0.1 * jax.random.normal(ks[5], (F2, C1, 1, 1), jnp.float32),   # pointwise
        "wfc": 0.05 * jax.random.normal(ks[6], (NCLS, FF), jnp.float32),
        "bfc": 0.05 * jax.random.normal(ks[7], (NCLS,), jnp.float32),
    }
    return raw


def fold_params(raw):
    """Fold BN0/BN1/BN2, ZeroPad and depthwise+pointwise into dense bf16 matmul
    operands laid out for the single-pass fused kernel (done once, wrapper-side)."""
    g0, be0, m0, v0 = raw["bn0"]
    g1, be1, m1_, v1 = raw["bn1"]
    g2, be2, m2, v2 = raw["bn2"]
    s0 = g0 / jnp.sqrt(v0 + EPS); b0 = be0 - m0 * s0
    s1 = g1 / jnp.sqrt(v1 + EPS); b1 = be1 - m1_ * s1
    s2 = g2 / jnp.sqrt(v2 + EPS); b2 = be2 - m2 * s2

    w1_2d = raw["w1"][:, 0, :, 0]          # (C1, KH)
    w2_2d = raw["w2"][:, 0, 0, :]          # (C1, KW)
    wp_2d = raw["wp"][:, :, 0, 0]          # (F2, C1)
    wfc, bfc = raw["wfc"], raw["bfc"]

    groups = jnp.arange(C1) // (C1 // CIN)                           # group per out chan

    # block1 banded matrices (BN0 scale folded; BN0 shift -> ones column)
    w1s = w1_2d * s0[groups][:, None]                                # (C1, KH)
    cols = (groups[:, None, None] * H
            + jnp.arange(HOUT1)[None, :, None]
            + jnp.arange(KH)[None, None, :])                         # (C1, HOUT1, KH)
    c_idx = jnp.broadcast_to(jnp.arange(C1)[:, None, None], cols.shape)
    r_idx = jnp.broadcast_to(jnp.arange(HOUT1)[None, :, None], cols.shape)
    vals = jnp.broadcast_to(w1s[:, None, :], cols.shape)
    m1 = jnp.zeros((C1, HOUT1, XROWS), jnp.float32)
    m1 = m1.at[c_idx, r_idx, cols].set(vals)
    bias1 = b0[groups] * jnp.sum(w1_2d, axis=1)                      # (C1,)
    m1 = m1.at[:, :, CIN * H].set(bias1[:, None])
    # pad HOUT1 -> HP with zero rows, flatten rows as (c*HP + h), cast bf16
    m1p = jnp.pad(m1, ((0, 0), (0, HP - HOUT1), (0, 0)))
    m1_flat = m1p.reshape(C1 * HP, XROWS).astype(jnp.bfloat16)

    # block2: depthwise(1,16) [ZeroPad2d((3,4,0,0)) folded] x pointwise 1x1
    kwv = jnp.arange(W)[:, None] + 3 - jnp.arange(WOUT2)[None, :]    # (W, WOUT2)
    valid = ((kwv >= 0) & (kwv < KW)).astype(jnp.float32)
    band = w2_2d[:, jnp.clip(kwv, 0, KW - 1)] * valid[None]          # (C1, W, WOUT2)
    k2_full = wp_2d.T[:, None, :, None] * band[:, :, None, :]        # (C1, W, F2, WOUT2)
    k2 = (s1[:, None, None, None] * k2_full).reshape(C1 * W, CW)     # BN1 scale folded
    k2 = k2.astype(jnp.bfloat16)                                     # rows = c*W + w
    c2 = jnp.einsum("c,cwj->j", b1, k2_full.reshape(C1, W, CW))[None, :]   # BN1 shift

    # fc with BN2 folded; rows ordered (h*CW + f*WOUT2 + wo) to match z2 layout
    wfc_r = wfc.reshape(NCLS, F2, HOUT1, WOUT2)
    wfc_flat = jnp.transpose(wfc_r * s2[None, :, None, None],
                             (2, 1, 3, 0)).reshape(HOUT1 * CW, NCLS)
    wfc_flat = wfc_flat.astype(jnp.bfloat16)
    bfc_eff = (bfc + jnp.einsum("kfhw,f->k", wfc_r, b2))[None, :]    # (1, NCLS)

    return {"m1": m1_flat, "k2": k2, "c2": c2, "wfc": wfc_flat, "bfc_eff": bfc_eff}


# ------------------------------ reference ------------------------------------
def ref_forward(x, raw):
    """Pure-JAX f32 reference matching the PyTorch module in eval mode."""
    def bn(v, g, b, m, var):
        return ((v - m[None, :, None, None])
                / jnp.sqrt(var[None, :, None, None] + EPS)
                * g[None, :, None, None] + b[None, :, None, None])

    dn = ("NCHW", "OIHW", "NCHW")
    y = bn(x, *raw["bn0"])
    y = jax.lax.conv_general_dilated(y, raw["w1"], (1, 1), "VALID",
                                     dimension_numbers=dn, feature_group_count=CIN)
    y = jnp.maximum(y, 0.0)
    y = bn(y, *raw["bn1"])
    y = jnp.pad(y, ((0, 0), (0, 0), (0, 0), (3, 4)))
    y = jax.lax.conv_general_dilated(y, raw["w2"], (1, 1), "VALID",
                                     dimension_numbers=dn, feature_group_count=C1)
    y = jax.lax.conv_general_dilated(y, raw["wp"], (1, 1), "VALID",
                                     dimension_numbers=dn)
    y = jnp.maximum(y, 0.0)
    y = bn(y, *raw["bn2"])
    y = y.reshape(y.shape[0], -1)
    return y @ raw["wfc"].T + raw["bfc"][None, :]


# ---------------------------------- main --------------------------------------
if __name__ == "__main__":
    key = jax.random.PRNGKey(0)
    kx, kp = jax.random.split(key)
    x = jax.random.normal(kx, (N, CIN, H, W), jnp.float32)
    raw = make_raw_params(kp)
    kparams = fold_params(raw)

    fwd = jax.jit(conv_psi_forward)
    out = jax.block_until_ready(fwd(x, kparams))

    ref = ref_forward(x, raw)
    assert out.shape == (N, NCLS)
    # bf16 matmul operands (f32 accumulation): 2e-2 tolerance vs the f32 reference.
    err = jnp.max(jnp.abs(out - ref))
    assert jnp.allclose(out, ref, rtol=2e-2, atol=2e-2), f"mismatch: max abs err {err}"

    print("KERNEL_OK")
</pallas_src>

<mosaic_0001>
module attributes {stable_mosaic.version = 11 : i64} {
  func.func @fused_kernel(%arg0: i32, %arg1: memref<81x48xbf16, #tpu.memory_space<vmem>>, %arg2: memref<128x81xbf16, #tpu.memory_space<vmem>>, %arg3: memref<192x128xbf16, #tpu.memory_space<vmem>>, %arg4: memref<1x128xf32, #tpu.memory_space<vmem>>, %arg5: memref<1152x4xbf16, #tpu.memory_space<vmem>>, %arg6: memref<1x4xf32, #tpu.memory_space<vmem>>, %arg7: memref<2x4xf32, #tpu.memory_space<vmem>>, %arg8: memref<128x48xf32, #tpu.memory_space<vmem>>, %arg9: memref<32x192xf32, #tpu.memory_space<vmem>>, %arg10: memref<2x1152xf32, #tpu.memory_space<vmem>>) attributes {dimension_semantics = [#tpu.dimension_semantics<arbitrary>], iteration_bounds = array<i64: 1>, scalar_prefetch = 0 : i64, scratch_operands = 3 : i64, tpu.core_type = #tpu.core_type<tc>, window_params = [{pipeline_mode = #tpu.pipeline_mode<synchronous>, transform_indices = @transform_0, window_bounds = array<i64: 81, 48>}, {pipeline_mode = #tpu.pipeline_mode<synchronous>, transform_indices = @transform_1, window_bounds = array<i64: 128, 81>}, {pipeline_mode = #tpu.pipeline_mode<synchronous>, transform_indices = @transform_2, window_bounds = array<i64: 192, 128>}, {pipeline_mode = #tpu.pipeline_mode<synchronous>, transform_indices = @transform_3, window_bounds = array<i64: 1, 128>}, {pipeline_mode = #tpu.pipeline_mode<synchronous>, transform_indices = @transform_4, window_bounds = array<i64: 1152, 4>}, {pipeline_mode = #tpu.pipeline_mode<synchronous>, transform_indices = @transform_5, window_bounds = array<i64: 1, 4>}, {pipeline_mode = #tpu.pipeline_mode<synchronous>, transform_indices = @transform_6, window_bounds = array<i64: 2, 4>}]} {
    %c0 = arith.constant 0 : index
    %c0_0 = arith.constant 0 : index
    %0 = vector.load %arg2[%c0, %c0_0] : memref<128x81xbf16, #tpu.memory_space<vmem>>, vector<128x81xbf16>
    %c0_1 = arith.constant 0 : index
    %c0_2 = arith.constant 0 : index
    %1 = vector.load %arg1[%c0_1, %c0_2] : memref<81x48xbf16, #tpu.memory_space<vmem>>, vector<81x48xbf16>
    %cst = arith.constant dense<0.000000e+00> : vector<128x48xf32>
    %2 = tpu.matmul %0, %1, %cst {dimension_numbers = #tpu.dot_dimension_numbers<[1], [0], [0], [1], [0, 0, 1, 1], [], []>} : vector<128x81xbf16>, vector<81x48xbf16>, vector<128x48xf32> -> vector<128x48xf32>
    %cst_3 = arith.constant 0.000000e+00 : f32
    %3 = vector.broadcast %cst_3 : f32 to vector<128x48xf32>
    %4 = arith.maximumf %2, %3 : vector<128x48xf32>
    %c0_4 = arith.constant 0 : index
    %c0_5 = arith.constant 0 : index
    %5 = vector.load %arg8[%c0_4, %c0_5] : memref<128x48xf32, #tpu.memory_space<vmem>>, vector<128x48xf32>
    tpu.vector_store %arg8[%c0_4, %c0_5], %4 {strides = array<i32>} : memref<128x48xf32, #tpu.memory_space<vmem>>, vector<128x48xf32>,
    %c0_6 = arith.constant 0 : index
    %c0_7 = arith.constant 0 : index
    %6 = vector.load %arg8[%c0_6, %c0_7] : memref<128x48xf32, #tpu.memory_space<vmem>>, vector<16x24xf32>
    %c0_8 = arith.constant 0 : index
    %c0_9 = arith.constant 0 : index
    %7 = vector.load %arg9[%c0_8, %c0_9] : memref<32x192xf32, #tpu.memory_space<vmem>>, vector<16x24xf32>
    tpu.vector_store %arg9[%c0_8, %c0_9], %6 {strides = array<i32>} : memref<32x192xf32, #tpu.memory_space<vmem>>, vector<16x24xf32>,
    %c16 = arith.constant 16 : index
    %c0_10 = arith.constant 0 : index
    %8 = vector.load %arg8[%c16, %c0_10] : memref<128x48xf32, #tpu.memory_space<vmem>>, vector<16x24xf32>
    %c0_11 = arith.constant 0 : index
    %c24 = arith.constant 24 : index
    %9 = vector.load %arg9[%c0_11, %c24] : memref<32x192xf32, #tpu.memory_space<vmem>>, vector<16x24xf32>
    tpu.vector_store %arg9[%c0_11, %c24], %8 {strides = array<i32>} : memref<32x192xf32, #tpu.memory_space<vmem>>, vector<16x24xf32>,
    %c32 = arith.constant 32 : index
    %c0_12 = arith.constant 0 : index
    %10 = vector.load %arg8[%c32, %c0_12] : memref<128x48xf32, #tpu.memory_space<vmem>>, vector<16x24xf32>
    %c0_13 = arith.constant 0 : index
    %c48 = arith.constant 48 : index
    %11 = vector.load %arg9[%c0_13, %c48] : memref<32x192xf32, #tpu.memory_space<vmem>>, vector<16x24xf32>
    tpu.vector_store %arg9[%c0_13, %c48], %10 {strides = array<i32>} : memref<32x192xf32, #tpu.memory_space<vmem>>, vector<16x24xf32>,
    %c48_14 = arith.constant 48 : index
    %c0_15 = arith.constant 0 : index
    %12 = vector.load %arg8[%c48_14, %c0_15] : memref<128x48xf32, #tpu.memory_space<vmem>>, vector<16x24xf32>
    %c0_16 = arith.constant 0 : index
    %c72 = arith.constant 72 : index
    %13 = vector.load %arg9[%c0_16, %c72] : memref<32x192xf32, #tpu.memory_space<vmem>>, vector<16x24xf32>
    tpu.vector_store %arg9[%c0_16, %c72], %12 {strides = array<i32>} : memref<32x192xf32, #tpu.memory_space<vmem>>, vector<16x24xf32>,
    %c64 = arith.constant 64 : index
    %c0_17 = arith.constant 0 : index
    %14 = vector.load %arg8[%c64, %c0_17] : memref<128x48xf32, #tpu.memory_space<vmem>>, vector<16x24xf32>
    %c0_18 = arith.constant 0 : index
    %c96 = arith.constant 96 : index
    %15 = vector.load %arg9[%c0_18, %c96] : memref<32x192xf32, #tpu.memory_space<vmem>>, vector<16x24xf32>
    tpu.vector_store %arg9[%c0_18, %c96], %14 {strides = array<i32>} : memref<32x192xf32, #tpu.memory_space<vmem>>, vector<16x24xf32>,
    %c80 = arith.constant 80 : index
    %c0_19 = arith.constant 0 : index
    %16 = vector.load %arg8[%c80, %c0_19] : memref<128x48xf32, #tpu.memory_space<vmem>>, vector<16x24xf32>
    %c0_20 = arith.constant 0 : index
    %c120 = arith.constant 120 : index
    %17 = vector.load %arg9[%c0_20, %c120] : memref<32x192xf32, #tpu.memory_space<vmem>>, vector<16x24xf32>
    tpu.vector_store %arg9[%c0_20, %c120], %16 {strides = array<i32>} : memref<32x192xf32, #tpu.memory_space<vmem>>, vector<16x24xf32>,
    %c96_21 = arith.constant 96 : index
    %c0_22 = arith.constant 0 : index
    %18 = vector.load %arg8[%c96_21, %c0_22] : memref<128x48xf32, #tpu.memory_space<vmem>>, vector<16x24xf32>
    %c0_23 = arith.constant 0 : index
    %c144 = arith.constant 144 : index
    %19 = vector.load %arg9[%c0_23, %c144] : memref<32x192xf32, #tpu.memory_space<vmem>>, vector<16x24xf32>
    tpu.vector_store %arg9[%c0_23, %c144], %18 {strides = array<i32>} : memref<32x192xf32, #tpu.memory_space<vmem>>, vector<16x24xf32>,
    %c112 = arith.constant 112 : index
    %c0_24 = arith.constant 0 : index
    %20 = vector.load %arg8[%c112, %c0_24] : memref<128x48xf32, #tpu.memory_space<vmem>>, vector<16x24xf32>
    %c0_25 = arith.constant 0 : index
    %c168 = arith.constant 168 : index
    %21 = vector.load %arg9[%c0_25, %c168] : memref<32x192xf32, #tpu.memory_space<vmem>>, vector<16x24xf32>
    tpu.vector_store %arg9[%c0_25, %c168], %20 {strides = array<i32>} : memref<32x192xf32, #tpu.memory_space<vmem>>, vector<16x24xf32>,
    %c0_26 = arith.constant 0 : index
    %c24_27 = arith.constant 24 : index
    %22 = vector.load %arg8[%c0_26, %c24_27] : memref<128x48xf32, #tpu.memory_space<vmem>>, vector<16x24xf32>
    %c16_28 = arith.constant 16 : index
    %c0_29 = arith.constant 0 : index
    %23 = vector.load %arg9[%c16_28, %c0_29] : memref<32x192xf32, #tpu.memory_space<vmem>>, vector<16x24xf32>
    tpu.vector_store %arg9[%c16_28, %c0_29], %22 {strides = array<i32>} : memref<32x192xf32, #tpu.memory_space<vmem>>, vector<16x24xf32>,
    %c16_30 = arith.constant 16 : index
    %c24_31 = arith.constant 24 : index
    %24 = vector.load %arg8[%c16_30, %c24_31] : memref<128x48xf32, #tpu.memory_space<vmem>>, vector<16x24xf32>
    %c16_32 = arith.constant 16 : index
    %c24_33 = arith.constant 24 : index
    %25 = vector.load %arg9[%c16_32, %c24_33] : memref<32x192xf32, #tpu.memory_space<vmem>>, vector<16x24xf32>
    tpu.vector_store %arg9[%c16_32, %c24_33], %24 {strides = array<i32>} : memref<32x192xf32, #tpu.memory_space<vmem>>, vector<16x24xf32>,
    %c32_34 = arith.constant 32 : index
    %c24_35 = arith.constant 24 : index
    %26 = vector.load %arg8[%c32_34, %c24_35] : memref<128x48xf32, #tpu.memory_space<vmem>>, vector<16x24xf32>
    %c16_36 = arith.constant 16 : index
    %c48_37 = arith.constant 48 : index
    %27 = vector.load %arg9[%c16_36, %c48_37] : memref<32x192xf32, #tpu.memory_space<vmem>>, vector<16x24xf32>
    tpu.vector_store %arg9[%c16_36, %c48_37], %26 {strides = array<i32>} : memref<32x192xf32, #tpu.memory_space<vmem>>, vector<16x24xf32>,
    %c48_38 = arith.constant 48 : index
    %c24_39 = arith.constant 24 : index
    %28 = vector.load %arg8[%c48_38, %c24_39] : memref<128x48xf32, #tpu.memory_space<vmem>>, vector<16x24xf32>
    %c16_40 = arith.constant 16 : index
    %c72_41 = arith.constant 72 : index
    %29 = vector.load %arg9[%c16_40, %c72_41] : memref<32x192xf32, #tpu.memory_space<vmem>>, vector<16x24xf32>
    tpu.vector_store %arg9[%c16_40, %c72_41], %28 {strides = array<i32>} : memref<32x192xf32, #tpu.memory_space<vmem>>, vector<16x24xf32>,
    %c64_42 = arith.constant 64 : index
    %c24_43 = arith.constant 24 : index
    %30 = vector.load %arg8[%c64_42, %c24_43] : memref<128x48xf32, #tpu.memory_space<vmem>>, vector<16x24xf32>
    %c16_44 = arith.constant 16 : index
    %c96_45 = arith.constant 96 : index
    %31 = vector.load %arg9[%c16_44, %c96_45] : memref<32x192xf32, #tpu.memory_space<vmem>>, vector<16x24xf32>
    tpu.vector_store %arg9[%c16_44, %c96_45], %30 {strides = array<i32>} : memref<32x192xf32, #tpu.memory_space<vmem>>, vector<16x24xf32>,
    %c80_46 = arith.constant 80 : index
    %c24_47 = arith.constant 24 : index
    %32 = vector.load %arg8[%c80_46, %c24_47] : memref<128x48xf32, #tpu.memory_space<vmem>>, vector<16x24xf32>
    %c16_48 = arith.constant 16 : index
    %c120_49 = arith.constant 120 : index
    %33 = vector.load %arg9[%c16_48, %c120_49] : memref<32x192xf32, #tpu.memory_space<vmem>>, vector<16x24xf32>
    tpu.vector_store %arg9[%c16_48, %c120_49], %32 {strides = array<i32>} : memref<32x192xf32, #tpu.memory_space<vmem>>, vector<16x24xf32>,
    %c96_50 = arith.constant 96 : index
    %c24_51 = arith.constant 24 : index
    %34 = vector.load %arg8[%c96_50, %c24_51] : memref<128x48xf32, #tpu.memory_space<vmem>>, vector<16x24xf32>
    %c16_52 = arith.constant 16 : index
    %c144_53 = arith.constant 144 : index
    %35 = vector.load %arg9[%c16_52, %c144_53] : memref<32x192xf32, #tpu.memory_space<vmem>>, vector<16x24xf32>
    tpu.vector_store %arg9[%c16_52, %c144_53], %34 {strides = array<i32>} : memref<32x192xf32, #tpu.memory_space<vmem>>, vector<16x24xf32>,
    %c112_54 = arith.constant 112 : index
    %c24_55 = arith.constant 24 : index
    %36 = vector.load %arg8[%c112_54, %c24_55] : memref<128x48xf32, #tpu.memory_space<vmem>>, vector<16x24xf32>
    %c16_56 = arith.constant 16 : index
    %c168_57 = arith.constant 168 : index
    %37 = vector.load %arg9[%c16_56, %c168_57] : memref<32x192xf32, #tpu.memory_space<vmem>>, vector<16x24xf32>
    tpu.vector_store %arg9[%c16_56, %c168_57], %36 {strides = array<i32>} : memref<32x192xf32, #tpu.memory_space<vmem>>, vector<16x24xf32>,
    %c0_58 = arith.constant 0 : index
    %c0_59 = arith.constant 0 : index
    %38 = vector.load %arg9[%c0_58, %c0_59] : memref<32x192xf32, #tpu.memory_space<vmem>>, vector<32x192xf32>
    %39 = arith.truncf %38 : vector<32x192xf32> to vector<32x192xbf16>
    %c0_60 = arith.constant 0 : index
    %c0_61 = arith.constant 0 : index
    %40 = vector.load %arg3[%c0_60, %c0_61] : memref<192x128xbf16, #tpu.memory_space<vmem>>, vector<192x128xbf16>
    %cst_62 = arith.constant dense<0.000000e+00> : vector<32x128xf32>
    %41 = tpu.matmul %39, %40, %cst_62 {dimension_numbers = #tpu.dot_dimension_numbers<[1], [0], [0], [1], [0, 0, 1, 1], [], []>} : vector<32x192xbf16>, vector<192x128xbf16>, vector<32x128xf32> -> vector<32x128xf32>
    %c0_63 = arith.constant 0 : index
    %c0_64 = arith.constant 0 : index
    %42 = vector.load %arg4[%c0_63, %c0_64] : memref<1x128xf32, #tpu.memory_space<vmem>>, vector<1x128xf32>
    %43 = vector.broadcast %42 : vector<1x128xf32> to vector<32x128xf32>
    %44 = arith.addf %41, %43 : vector<32x128xf32>
    %cst_65 = arith.constant 0.000000e+00 : f32
    %45 = vector.broadcast %cst_65 : f32 to vector<32x128xf32>
    %46 = arith.maximumf %44, %45 : vector<32x128xf32>
    %47 = vector.extract_strided_slice %46 {offsets = [0, 0], sizes = [1, 128], strides = [1, 1]} : vector<32x128xf32> to vector<1x128xf32>
    %c0_66 = arith.constant 0 : index
    %c0_67 = arith.constant 0 : index
    %48 = vector.load %arg10[%c0_66, %c0_67] : memref<2x1152xf32, #tpu.memory_space<vmem>>, vector<1x128xf32>
    tpu.vector_store %arg10[%c0_66, %c0_67], %47 {strides = array<i32>} : memref<2x1152xf32, #tpu.memory_space<vmem>>, vector<1x128xf32>,
    %49 = vector.extract_strided_slice %46 {offsets = [1, 0], sizes = [1, 128], strides = [1, 1]} : vector<32x128xf32> to vector<1x128xf32>
    %c0_68 = arith.constant 0 : index
    %c128 = arith.constant 128 : index
    %50 = vector.load %arg10[%c0_68, %c128] : memref<2x1152xf32, #tpu.memory_space<vmem>>, vector<1x128xf32>
    tpu.vector_store %arg10[%c0_68, %c128], %49 {strides = array<i32>} : memref<2x1152xf32, #tpu.memory_space<vmem>>, vector<1x128xf32>,
    %51 = vector.extract_strided_slice %46 {offsets = [2, 0], sizes = [1, 128], strides = [1, 1]} : vector<32x128xf32> to vector<1x128xf32>
    %c0_69 = arith.constant 0 : index
    %c256 = arith.constant 256 : index
    %52 = vector.load %arg10[%c0_69, %c256] : memref<2x1152xf32, #tpu.memory_space<vmem>>, vector<1x128xf32>
    tpu.vector_store %arg10[%c0_69, %c256], %51 {strides = array<i32>} : memref<2x1152xf32, #tpu.memory_space<vmem>>, vector<1x128xf32>,
    %53 = vector.extract_strided_slice %46 {offsets = [3, 0], sizes = [1, 128], strides = [1, 1]} : vector<32x128xf32> to vector<1x128xf32>
    %c0_70 = arith.constant 0 : index
    %c384 = arith.constant 384 : index
    %54 = vector.load %arg10[%c0_70, %c384] : memref<2x1152xf32, #tpu.memory_space<vmem>>, vector<1x128xf32>
    tpu.vector_store %arg10[%c0_70, %c384], %53 {strides = array<i32>} : memref<2x1152xf32, #tpu.memory_space<vmem>>, vector<1x128xf32>,
    %55 = vector.extract_strided_slice %46 {offsets = [4, 0], sizes = [1, 128], strides = [1, 1]} : vector<32x128xf32> to vector<1x128xf32>
    %c0_71 = arith.constant 0 : index
    %c512 = arith.constant 512 : index
    %56 = vector.load %arg10[%c0_71, %c512] : memref<2x1152xf32, #tpu.memory_space<vmem>>, vector<1x128xf32>
    tpu.vector_store %arg10[%c0_71, %c512], %55 {strides = array<i32>} : memref<2x1152xf32, #tpu.memory_space<vmem>>, vector<1x128xf32>,
    %57 = vector.extract_strided_slice %46 {offsets = [5, 0], sizes = [1, 128], strides = [1, 1]} : vector<32x128xf32> to vector<1x128xf32>
    %c0_72 = arith.constant 0 : index
    %c640 = arith.constant 640 : index
    %58 = vector.load %arg10[%c0_72, %c640] : memref<2x1152xf32, #tpu.memory_space<vmem>>, vector<1x128xf32>
    tpu.vector_store %arg10[%c0_72, %c640], %57 {strides = array<i32>} : memref<2x1152xf32, #tpu.memory_space<vmem>>, vector<1x128xf32>,
    %59 = vector.extract_strided_slice %46 {offsets = [6, 0], sizes = [1, 128], strides = [1, 1]} : vector<32x128xf32> to vector<1x128xf32>
    %c0_73 = arith.constant 0 : index
    %c768 = arith.constant 768 : index
    %60 = vector.load %arg10[%c0_73, %c768] : memref<2x1152xf32, #tpu.memory_space<vmem>>, vector<1x128xf32>
    tpu.vector_store %arg10[%c0_73, %c768], %59 {strides = array<i32>} : memref<2x1152xf32, #tpu.memory_space<vmem>>, vector<1x128xf32>,
    %61 = vector.extract_strided_slice %46 {offsets = [7, 0], sizes = [1, 128], strides = [1, 1]} : vector<32x128xf32> to vector<1x128xf32>
    %c0_74 = arith.constant 0 : index
    %c896 = arith.constant 896 : index
    %62 = vector.load %arg10[%c0_74, %c896] : memref<2x1152xf32, #tpu.memory_space<vmem>>, vector<1x128xf32>
    tpu.vector_store %arg10[%c0_74, %c896], %61 {strides = array<i32>} : memref<2x1152xf32, #tpu.memory_space<vmem>>, vector<1x128xf32>,
    %63 = vector.extract_strided_slice %46 {offsets = [8, 0], sizes = [1, 128], strides = [1, 1]} : vector<32x128xf32> to vector<1x128xf32>
    %c0_75 = arith.constant 0 : index
    %c1024 = arith.constant 1024 : index
    %64 = vector.load %arg10[%c0_75, %c1024] : memref<2x1152xf32, #tpu.memory_space<vmem>>, vector<1x128xf32>
    tpu.vector_store %arg10[%c0_75, %c1024], %63 {strides = array<i32>} : memref<2x1152xf32, #tpu.memory_space<vmem>>, vector<1x128xf32>,
    %65 = vector.extract_strided_slice %46 {offsets = [16, 0], sizes = [1, 128], strides = [1, 1]} : vector<32x128xf32> to vector<1x128xf32>
    %c1 = arith.constant 1 : index
    %c0_76 = arith.constant 0 : index
    %66 = vector.load %arg10[%c1, %c0_76] : memref<2x1152xf32, #tpu.memory_space<vmem>>, vector<1x128xf32>
    tpu.vector_store %arg10[%c1, %c0_76], %65 {strides = array<i32>} : memref<2x1152xf32, #tpu.memory_space<vmem>>, vector<1x128xf32>,
    %67 = vector.extract_strided_slice %46 {offsets = [17, 0], sizes = [1, 128], strides = [1, 1]} : vector<32x128xf32> to vector<1x128xf32>
    %c1_77 = arith.constant 1 : index
    %c128_78 = arith.constant 128 : index
    %68 = vector.load %arg10[%c1_77, %c128_78] : memref<2x1152xf32, #tpu.memory_space<vmem>>, vector<1x128xf32>
    tpu.vector_store %arg10[%c1_77, %c128_78], %67 {strides = array<i32>} : memref<2x1152xf32, #tpu.memory_space<vmem>>, vector<1x128xf32>,
    %69 = vector.extract_strided_slice %46 {offsets = [18, 0], sizes = [1, 128], strides = [1, 1]} : vector<32x128xf32> to vector<1x128xf32>
    %c1_79 = arith.constant 1 : index
    %c256_80 = arith.constant 256 : index
    %70 = vector.load %arg10[%c1_79, %c256_80] : memref<2x1152xf32, #tpu.memory_space<vmem>>, vector<1x128xf32>
    tpu.vector_store %arg10[%c1_79, %c256_80], %69 {strides = array<i32>} : memref<2x1152xf32, #tpu.memory_space<vmem>>, vector<1x128xf32>,
    %71 = vector.extract_strided_slice %46 {offsets = [19, 0], sizes = [1, 128], strides = [1, 1]} : vector<32x128xf32> to vector<1x128xf32>
    %c1_81 = arith.constant 1 : index
    %c384_82 = arith.constant 384 : index
    %72 = vector.load %arg10[%c1_81, %c384_82] : memref<2x1152xf32, #tpu.memory_space<vmem>>, vector<1x128xf32>
    tpu.vector_store %arg10[%c1_81, %c384_82], %71 {strides = array<i32>} : memref<2x1152xf32, #tpu.memory_space<vmem>>, vector<1x128xf32>,
    %73 = vector.extract_strided_slice %46 {offsets = [20, 0], sizes = [1, 128], strides = [1, 1]} : vector<32x128xf32> to vector<1x128xf32>
    %c1_83 = arith.constant 1 : index
    %c512_84 = arith.constant 512 : index
    %74 = vector.load %arg10[%c1_83, %c512_84] : memref<2x1152xf32, #tpu.memory_space<vmem>>, vector<1x128xf32>
    tpu.vector_store %arg10[%c1_83, %c512_84], %73 {strides = array<i32>} : memref<2x1152xf32, #tpu.memory_space<vmem>>, vector<1x128xf32>,
    %75 = vector.extract_strided_slice %46 {offsets = [21, 0], sizes = [1, 128], strides = [1, 1]} : vector<32x128xf32> to vector<1x128xf32>
    %c1_85 = arith.constant 1 : index
    %c640_86 = arith.constant 640 : index
    %76 = vector.load %arg10[%c1_85, %c640_86] : memref<2x1152xf32, #tpu.memory_space<vmem>>, vector<1x128xf32>
    tpu.vector_store %arg10[%c1_85, %c640_86], %75 {strides = array<i32>} : memref<2x1152xf32, #tpu.memory_space<vmem>>, vector<1x128xf32>,
    %77 = vector.extract_strided_slice %46 {offsets = [22, 0], sizes = [1, 128], strides = [1, 1]} : vector<32x128xf32> to vector<1x128xf32>
    %c1_87 = arith.constant 1 : index
    %c768_88 = arith.constant 768 : index
    %78 = vector.load %arg10[%c1_87, %c768_88] : memref<2x1152xf32, #tpu.memory_space<vmem>>, vector<1x128xf32>
    tpu.vector_store %arg10[%c1_87, %c768_88], %77 {strides = array<i32>} : memref<2x1152xf32, #tpu.memory_space<vmem>>, vector<1x128xf32>,
    %79 = vector.extract_strided_slice %46 {offsets = [23, 0], sizes = [1, 128], strides = [1, 1]} : vector<32x128xf32> to vector<1x128xf32>
    %c1_89 = arith.constant 1 : index
    %c896_90 = arith.constant 896 : index
    %80 = vector.load %arg10[%c1_89, %c896_90] : memref<2x1152xf32, #tpu.memory_space<vmem>>, vector<1x128xf32>
    tpu.vector_store %arg10[%c1_89, %c896_90], %79 {strides = array<i32>} : memref<2x1152xf32, #tpu.memory_space<vmem>>, vector<1x128xf32>,
    %81 = vector.extract_strided_slice %46 {offsets = [24, 0], sizes = [1, 128], strides = [1, 1]} : vector<32x128xf32> to vector<1x128xf32>
    %c1_91 = arith.constant 1 : index
    %c1024_92 = arith.constant 1024 : index
    %82 = vector.load %arg10[%c1_91, %c1024_92] : memref<2x1152xf32, #tpu.memory_space<vmem>>, vector<1x128xf32>
    tpu.vector_store %arg10[%c1_91, %c1024_92], %81 {strides = array<i32>} : memref<2x1152xf32, #tpu.memory_space<vmem>>, vector<1x128xf32>,
    %c0_93 = arith.constant 0 : index
    %c0_94 = arith.constant 0 : index
    %83 = vector.load %arg10[%c0_93, %c0_94] : memref<2x1152xf32, #tpu.memory_space<vmem>>, vector<2x1152xf32>
    %84 = arith.truncf %83 : vector<2x1152xf32> to vector<2x1152xbf16>
    %c0_95 = arith.constant 0 : index
    %c0_96 = arith.constant 0 : index
    %85 = vector.load %arg5[%c0_95, %c0_96] : memref<1152x4xbf16, #tpu.memory_space<vmem>>, vector<1152x4xbf16>
    %cst_97 = arith.constant dense<0.000000e+00> : vector<2x4xf32>
    %86 = tpu.matmul %84, %85, %cst_97 {dimension_numbers = #tpu.dot_dimension_numbers<[1], [0], [0], [1], [0, 0, 1, 1], [], []>} : vector<2x1152xbf16>, vector<1152x4xbf16>, vector<2x4xf32> -> vector<2x4xf32>
    %c0_98 = arith.constant 0 : index
    %c0_99 = arith.constant 0 : index
    %87 = vector.load %arg6[%c0_98, %c0_99] : memref<1x4xf32, #tpu.memory_space<vmem>>, vector<1x4xf32>
    %88 = vector.broadcast %87 : vector<1x4xf32> to vector<2x4xf32>
    %89 = arith.addf %86, %88 : vector<2x4xf32>
    %c0_100 = arith.constant 0 : index
    %c0_101 = arith.constant 0 : index
    %90 = vector.load %arg7[%c0_100, %c0_101] : memref<2x4xf32, #tpu.memory_space<vmem>>, vector<2x4xf32>
    tpu.vector_store %arg7[%c0_100, %c0_101], %89 {strides = array<i32>} : memref<2x4xf32, #tpu.memory_space<vmem>>, vector<2x4xf32>,
    return
  }
  func.func @transform_0(%arg0: i32) -> (i32, i32) {
    %c0_i32 = arith.constant 0 : i32
    %c0_i32_0 = arith.constant 0 : i32
    %c0_i32_1 = arith.constant 0 : i32
    return %c0_i32, %c0_i32_0 : i32, i32
  }
  func.func @transform_1(%arg0: i32) -> (i32, i32) {
    %c0_i32 = arith.constant 0 : i32
    %c0_i32_0 = arith.constant 0 : i32
    %c0_i32_1 = arith.constant 0 : i32
    return %c0_i32, %c0_i32_0 : i32, i32
  }
  func.func @transform_2(%arg0: i32) -> (i32, i32) {
    %c0_i32 = arith.constant 0 : i32
    %c0_i32_0 = arith.constant 0 : i32
    %c0_i32_1 = arith.constant 0 : i32
    return %c0_i32, %c0_i32_0 : i32, i32
  }
  func.func @transform_3(%arg0: i32) -> (i32, i32) {
    %c0_i32 = arith.constant 0 : i32
    %c0_i32_0 = arith.constant 0 : i32
    %c0_i32_1 = arith.constant 0 : i32
    return %c0_i32, %c0_i32_0 : i32, i32
  }
  func.func @transform_4(%arg0: i32) -> (i32, i32) {
    %c0_i32 = arith.constant 0 : i32
    %c0_i32_0 = arith.constant 0 : i32
    %c0_i32_1 = arith.constant 0 : i32
    return %c0_i32, %c0_i32_0 : i32, i32
  }
  func.func @transform_5(%arg0: i32) -> (i32, i32) {
    %c0_i32 = arith.constant 0 : i32
    %c0_i32_0 = arith.constant 0 : i32
    %c0_i32_1 = arith.constant 0 : i32
    return %c0_i32, %c0_i32_0 : i32, i32
  }
  func.func @transform_6(%arg0: i32) -> (i32, i32) {
    %c0_i32 = arith.constant 0 : i32
    %c0_i32_0 = arith.constant 0 : i32
    %c0_i32_1 = arith.constant 0 : i32
    return %c0_i32, %c0_i32_0 : i32, i32
  }
}

</mosaic_0001>

<bundles_post_ra>
// kernel: conv_psi_forward.1
= control target key start
LH: loop header
LB: loop body
LE: loop exit
PB: predicated region body
PF: predicated region fallthrough
CT: control target
= control target key end

     0   :  { %vm150_vm0 = vcmask 1040384   ;;  %v1967_v2 = vmov 0   ;;  %s2449_s0 = inlined_call_operand.vmem [shape: bf16[81,48], index: 0, kind: input, shape index: {}]   ;;  %s2450_s1 = inlined_call_operand.vmem [shape: bf16[128,81], index: 1, kind: input, shape index: {}]   ;;  %s2451_s2 = inlined_call_operand.vmem [shape: bf16[192,128], index: 2, kind: input, shape index: {}]   ;;  %s2452_s3 = inlined_call_operand.vmem [shape: f32[1,128], index: 3, kind: input, shape index: {}]   ;;  %s2453_s4 = inlined_call_operand.vmem [shape: bf16[1152,4], index: 4, kind: input, shape index: {}]   ;;  %s2454_s5 = inlined_call_operand.vmem [shape: f32[1,4], index: 5, kind: input, shape index: {}]   ;;  %s2455_s6 = inlined_call_operand.hbm [shape: f32[2,4], index: 6, kind: output, shape index: {}]  }
   0x1   :  { %v51_v0 = vld [vmem:[%s2449_s0 + $0x28] sm:$0x1]  ;;  %v152_v3 = vsel %vm150_vm0, 65535, %v1967_v2 }
   0x2   :  { %v113_v1 = vunpack.c.l.b16 %v51_v0 }
   0x4   :  { %v119_v4 = vpack.c.b16 %v113_v1, %v113_v1 }
   0x5   :  { %11 = vsyncpa [#allocation6], 0  ;;  %v1844_v6 = vld [vmem:[%s2449_s0 + $0x20] sm:$0xff]  ;;  %v1843_v7 = vld [vmem:[%s2449_s0 + $0x18] sm:$0xff]  ;;  %vm125_vm1 = vcmask 662528   ;;  %vm221_vm2 = vcmask 392192  }
   0x6   :  { %v154_v5 = vand.u32 %v152_v3, %v119_v4  ;;  %v1842_v8 = vld [vmem:[%s2449_s0 + $0x10] sm:$0xff]  ;;  %v1841_v9 = vld [vmem:[%s2449_s0 + $0x8] sm:$0xff]  ;;  %v1840_v10 = vld [vmem:[%s2449_s0] sm:$0xff]  ;;  %vm240_vm3 = vcmask 195584   ;;  %s1969_s24 = smov 48   ;;  %s1970_s25 = smov 72  }
   0x7   :  { %v1832_v11 = vld [vmem:[%s2450_s1] sm:$0xff]  ;;  %v1833_v12 = vld [vmem:[%s2450_s1 + $0x8] sm:$0xff]  ;;  %v1834_v13 = vld [vmem:[%s2450_s1 + $0x10] sm:$0xff]  ;;  %s1971_s26 = smov 96   ;;  %s1972_s27 = smov 120   ;;  %vm253_vm4 = vcmask 392384  }
   0x8   :  { %158 = vmatpush.bf16.msra.mxu0 %v154_v5  ;;  %v1835_v14 = vld [vmem:[%s2450_s1 + $0x18] sm:$0xff]  ;;  %v1836_v15 = vld [vmem:[%s2450_s1 + $0x20] sm:$0xff]  ;;  %v1837_v16 = vld [vmem:[%s2450_s1 + $0x28] sm:$0xff]  ;;  %s1973_s28 = smov 104   ;;  %s1974_s29 = smov 16   ;;  %vm266_vm5 = vcmask 589184  }
   0x9   :  { %v1838_v17 = vld [vmem:[%s2450_s1 + $0x30] sm:$0xff]  ;;  %v1839_v18 = vld [vmem:[%s2450_s1 + $0x38] sm:$0xff]  ;;  %s1968_s1 = smov 24   ;;  %s1975_s30 = smov 40   ;;  %vm279_vm6 = vcmask 785984   ;;  %vm307_vm7 = vcmask 130048  }
   0xa   :  { %vm321_vm8 = vcmask 326784   ;;  %vm334_vm9 = vcmask 523584   ;;  %vm292_vm10 = vcmask 982784   ;;  %vm305_vm11 = vcmask 1048512   ;;  %s1976_s10 = smov [#allocation5]   ;;  %s1417_s13 = sshll.u32 %s2455_s6, 4  ;;  %s1418_s13 = int_to_ptr.hbm [resolvable:$true] %s1417_s13 }
   0xb   :  { %vm539_vm12 = vcmask 523264   ;;  %s1415_s11 = sshll.u32 %s1976_s10, 4  ;;  %vm1408_vm13 = vcmask 25600   ;;  %s1416_s11 = int_to_ptr.vmem [resolvable:$true] %s1415_s11 }
   0xc   :  { %159 = vmatpush.bf16.msra.mxu0 %v1844_v6 }
  0x10   :  { %160 = vmatpush.bf16.msra.mxu0 %v1843_v7 }
  0x14   :  { %161 = vmatpush.bf16.msra.mxu0 %v1842_v8 }
  0x18   :  { %162 = vmatpush.bf16.msra.mxu0 %v1841_v9 }
  0x1c   :  { %163 = vmatpush.bf16.msra.mxu0 %v1840_v10 }
  0x1f   :  { %1478 = vmatmul.msk.bf16.vlgmr.msra.gmra.mxu0 %vm125_vm1, %v1832_v11  ;;  %v1852_v11 = vld [vmem:[%s2451_s2 + $0x38] sm:$0xff] }
  0x20   :  { %546 = vmatpush.bf16.msra.mxu1 %v1852_v11 }
  0x2f   :  { %1479 = vmatmul.msk.bf16.gmra.mxu0 %vm125_vm1, %v1833_v12 }
  0x3f   :  { %1480 = vmatmul.msk.bf16.gmra.mxu0 %vm125_vm1, %v1834_v13  ;;  %v1851_v13 = vld [vmem:[%s2451_s2 + $0x30] sm:$0xff] }
  0x40   :  { %547 = vmatpush.bf16.msra.mxu1 %v1851_v13  ;;  %v1870_v13 = vld [vmem:[%s2453_s4 + $0x68] sm:$0xff] }
  0x4f   :  { %1481 = vmatmul.msk.bf16.gmra.mxu0 %vm125_vm1, %v1835_v14  ;;  %v1856_v14 = vld [vmem:[%s2451_s2 + $0x58] sm:$0xff] }
  0x50   :  { %569 = vmatpush.bf16.msra.mxu2 %v1856_v14  ;;  %v1878_v14 = vld [vmem:[%s2453_s4 + $0xa8] sm:$0xff] }
  0x5f   :  { %1482 = vmatmul.msk.bf16.gmra.mxu0 %vm125_vm1, %v1836_v15  ;;  %v1850_v15 = vld [vmem:[%s2451_s2 + $0x28] sm:$0xff] }
  0x60   :  { %548 = vmatpush.bf16.msra.mxu1 %v1850_v15  ;;  %v1861_v15 = vld [vmem:[%s2453_s4 + $0x20] sm:$0xff] }
  0x6f   :  { %1483 = vmatmul.msk.bf16.gmra.mxu0 %vm125_vm1, %v1837_v16  ;;  %v1855_v16 = vld [vmem:[%s2451_s2 + $0x50] sm:$0xff] }
  0x70   :  { %570 = vmatpush.bf16.msra.mxu2 %v1855_v16 }
  0x7f   :  { %1484 = vmatmul.msk.bf16.gmra.mxu0 %vm125_vm1, %v1838_v17 }
  0x8f   :  { %1485 = vmatmul.msk.bf16.gmra.mxu0 %vm125_vm1, %v1839_v18 }
  0x9c   :  { %v165_v19 = vpop.f32.mrf.mxu0 }
  0x9d   :  { %v205_v20 = vmax.f32 %v165_v19, 0.0  ;;  %v1849_v19 = vld [vmem:[%s2451_s2 + $0x20] sm:$0xff] }
  0x9e   :  { %549 = vmatpush.bf16.msra.mxu1 %v1849_v19 }
  0x9f   :  { %222 = vst.msk [vmem:[#allocation2] sm:$0xff] %vm221_vm2, %v205_v20  ;;  %v1854_v20 = vld [vmem:[%s2451_s2 + $0x48] sm:$0xff] }
  0xa0   :  { %571 = vmatpush.bf16.msra.mxu2 %v1854_v20 }
  0xa4   :  { %v167_v21 = vpop.f32.mrf.mxu0 }
  0xa5   :  { %v206_v22 = vmax.f32 %v167_v21, 0.0  ;;  %v1848_v21 = vld [vmem:[%s2451_s2 + $0x18] sm:$0xff] }
  0xa6   :  { %v2055_v23 = vld [vmem:[#allocation2] sm:$0xff]  ;;  %550 = vmatpush.bf16.msra.mxu1 %v1848_v21 }
  0xa7   :  { %223 = vst.msk [vmem:[#allocation2 + $0x8] sm:$0xff] %vm221_vm2, %v206_v22  ;;  %v1853_v22 = vld [vmem:[%s2451_s2 + $0x40] sm:$0xff] }
  0xa8   :  { %241 = vst.msk [vmem:[#allocation3] sm:$0xff] %vm240_vm3, %v2055_v23  ;;  %572 = vmatpush.bf16.msra.mxu2 %v1853_v22  ;;  %v1860_v22 = vld [vmem:[%s2453_s4 + $0x18] sm:$0xff] }
  0xac   :  { %v170_v24 = vpop.f32.mrf.mxu0 }
  0xad   :  { %v207_v25 = vmax.f32 %v170_v24, 0.0 }
  0xae   :  { %v338_v26 = vld [vmem:[#allocation2 + $0x8] sm:$0xff] }
  0xaf   :  { %224 = vst.msk [vmem:[#allocation2 + $0x10] sm:$0xff] %vm221_vm2, %v207_v25  ;;  %v1847_v25 = vld [vmem:[%s2451_s2 + $0x10] sm:$0xff] }
  0xb0   :  { %242 = vst.msk [vmem:[#allocation3 + $0x10] sm:$0xff] %vm240_vm3, %v338_v26  ;;  %551 = vmatpush.bf16.msra.mxu1 %v1847_v25 }
  0xb4   :  { %v172_v27 = vpop.f32.mrf.mxu0 }
  0xb5   :  { %v208_v28 = vmax.f32 %v172_v27, 0.0 }
  0xb6   :  { %v2062_v29 = vld [vmem:[#allocation2 + $0x10] sm:$0xff] }
  0xb7   :  { %225 = vst.msk [vmem:[#allocation2 + $0x18] sm:$0xff] %vm221_vm2, %v208_v28  ;;  %247 = vrot.lane.b32.xlu2 %v2062_v29, %s1968_s1  ;;  %v1845_v28 = vld [vmem:[%s2451_s2] sm:$0xff] }
  0xbc   :  { %v175_v30 = vpop.f32.mrf.mxu0 }
  0xbd   :  { %v209_v31 = vmax.f32 %v175_v30, 0.0 }
  0xbe   :  { %v2067_v32 = vld [vmem:[#allocation2 + $0x18] sm:$0xff] }
  0xbf   :  { %226 = vst.msk [vmem:[#allocation2 + $0x20] sm:$0xff] %vm221_vm2, %v209_v31  ;;  %249 = vrot.lane.b32.xlu2 %v2067_v32, %s1968_s1 }
  0xc4   :  { %v177_v33 = vpop.f32.mrf.mxu0 }
  0xc5   :  { %v210_v34 = vmax.f32 %v177_v33, 0.0 }
  0xc6   :  { %v2072_v35 = vld [vmem:[#allocation2 + $0x20] sm:$0xff] }
  0xc7   :  { %227 = vst.msk [vmem:[#allocation2 + $0x28] sm:$0xff] %vm221_vm2, %v210_v34  ;;  %260 = vrot.lane.b32.xlu2 %v2072_v35, %s1969_s24 }
  0xcc   :  { %v180_v36 = vpop.f32.mrf.mxu0 }
  0xcd   :  { %v211_v37 = vmax.f32 %v180_v36, 0.0 }
  0xce   :  { %v257_v38 = vld [vmem:[#allocation2 + $0x28] sm:$0xff] }
  0xcf   :  { %228 = vst.msk [vmem:[#allocation2 + $0x30] sm:$0xff] %vm221_vm2, %v211_v37  ;;  %262 = vrot.lane.b32.xlu0 %v257_v38, %s1969_s24 }
  0xd4   :  { %v182_v39 = vpop.f32.mrf.mxu0 }
  0xd5   :  { %v212_v40 = vmax.f32 %v182_v39, 0.0 }
  0xd6   :  { %v2079_v41 = vld [vmem:[#allocation2 + $0x30] sm:$0xff] }
  0xd7   :  { %229 = vst.msk [vmem:[#allocation2 + $0x38] sm:$0xff] %vm221_vm2, %v212_v40  ;;  %273 = vrot.lane.b32.xlu1 %v2079_v41, %s1970_s25 }
  0xdc   :  { %v185_v42 = vpop.f32.mrf.mxu0 }
  0xdd   :  { %v213_v43 = vmax.f32 %v185_v42, 0.0 }
  0xde   :  { %v2084_v44 = vld [vmem:[#allocation2 + $0x38] sm:$0xff] }
  0xdf   :  { %230 = vst.msk [vmem:[#allocation2 + $0x40] sm:$0xff] %vm221_vm2, %v213_v43  ;;  %275 = vrot.lane.b32.xlu2 %v2084_v44, %s1970_s25 }
  0xe4   :  { %v187_v45 = vpop.f32.mrf.mxu0 }
  0xe5   :  { %v214_v46 = vmax.f32 %v187_v45, 0.0 }
  0xe6   :  { %v282_v2 = vld [vmem:[#allocation2 + $0x40] sm:$0xff] }
  0xe7   :  { %231 = vst.msk [vmem:[#allocation2 + $0x48] sm:$0xff] %vm221_vm2, %v214_v46 }
  0xec   :  { %v190_v47 = vpop.f32.mrf.mxu0 }
  0xed   :  { %v215_v48 = vmax.f32 %v190_v47, 0.0 }
  0xee   :  { %v283_v5 = vld [vmem:[#allocation2 + $0x48] sm:$0xff] }
  0xef   :  { %232 = vst.msk [vmem:[#allocation2 + $0x50] sm:$0xff] %vm221_vm2, %v215_v48 }
  0xf4   :  { %v192_v49 = vpop.f32.mrf.mxu0 }
  0xf5   :  { %v216_v50 = vmax.f32 %v192_v49, 0.0 }
  0xf6   :  { %v389_v51 = vld [vmem:[#allocation2 + $0x50] sm:$0xff] }
  0xf7   :  { %233 = vst.msk [vmem:[#allocation2 + $0x58] sm:$0xff] %vm221_vm2, %v216_v50  ;;  %393 = vrot.lane.b32.xlu2 %v389_v51, %s1971_s26  ;;  %299 = vrot.lane.b32.xlu0 %v389_v51, %s1972_s27 }
  0xfc   :  { %v195_v52 = vpop.f32.mrf.mxu0 }
  0xfd   :  { %v217_v53 = vmax.f32 %v195_v52, 0.0 }
  0xfe   :  { %v296_v54 = vld [vmem:[#allocation2 + $0x58] sm:$0xff] }
  0xff   :  { %234 = vst.msk [vmem:[#allocation2 + $0x60] sm:$0xff] %vm221_vm2, %v217_v53  ;;  %343 = vrot.lane.b32.xlu2 %v338_v26, %s1973_s28  ;;  %301 = vrot.lane.b32.xlu0 %v296_v54, %s1972_s27  ;;  %v1846_v26 = vld [vmem:[%s2451_s2 + $0x8] sm:$0xff] }
 0x100   :  { %552 = vmatpush.bf16.msra.mxu1 %v1846_v26 }
 0x104   :  { %v197_v55 = vpop.f32.mrf.mxu0  ;;  %553 = vmatpush.bf16.msra.mxu1 %v1845_v28 }
 0x105   :  { %v218_v56 = vmax.f32 %v197_v55, 0.0  ;;  %v2201_v55 = vld [vmem:[%s2452_s3] ss:$0 sm:$0xff] }
 0x106   :  { %v311_v57 = vld [vmem:[#allocation2 + $0x60] sm:$0xff] }
 0x107   :  { %235 = vst.msk [vmem:[#allocation2 + $0x68] sm:$0xff] %vm221_vm2, %v218_v56  ;;  %315 = vrot.lane.b32.xlu1 %v311_v57, %s1974_s29 }
 0x10c   :  { %v200_v58 = vpop.f32.mrf.mxu0 }
 0x10d   :  { %v219_v59 = vmax.f32 %v200_v58, 0.0 }
 0x10e   :  { %v312_v60 = vld [vmem:[#allocation2 + $0x68] sm:$0xff] }
 0x10f   :  { %236 = vst.msk [vmem:[#allocation2 + $0x70] sm:$0xff] %vm221_vm2, %v219_v59  ;;  %317 = vrot.lane.b32.xlu1 %v312_v60, %s1974_s29 }
 0x111   :  { %v248_v61 = vpop.permute.xlu2 %247 }
 0x112   :  { %254 = vst.msk [vmem:[#allocation3] sm:$0xff] %vm253_vm4, %v248_v61 }
 0x114   :  { %v202_v62 = vpop.f32.mrf.mxu0 }
 0x115   :  { %v220_v63 = vmax.f32 %v202_v62, 0.0 }
 0x116   :  { %v415_v0 = vld [vmem:[#allocation2 + $0x70] sm:$0xff] }
 0x117   :  { %237 = vst.msk [vmem:[#allocation2 + $0x78] sm:$0xff] %vm221_vm2, %v220_v63  ;;  %419 = vrot.lane.b32.xlu2 %v415_v0, %s1974_s29  ;;  %328 = vrot.lane.b32.xlu0 %v415_v0, %s1975_s30 }
 0x119   :  { %v250_v1 = vpop.permute.xlu2 %249 }
 0x11a   :  { %255 = vst.msk [vmem:[#allocation3 + $0x10] sm:$0xff] %vm253_vm4, %v250_v1 }
 0x11e   :  { %v325_v3 = vld [vmem:[#allocation2 + $0x78] sm:$0xff] }
 0x11f   :  { %359 = vrot.lane.b32.xlu2 %v257_v38, %s1968_s1  ;;  %286 = vrot.lane.b32.xlu0 %v282_v2, %s1971_s26 }
 0x120   :  { %330 = vrot.lane.b32.xlu1 %v325_v3, %s1975_s30 }
 0x121   :  { %v261_v4 = vpop.permute.xlu2 %260 }
 0x122   :  { %267 = vst.msk [vmem:[#allocation3] sm:$0xff] %vm266_vm5, %v261_v4  ;;  %v1864_v4 = vld [vmem:[%s2453_s4 + $0x38] sm:$0xff] }
 0x123   :  { %1291 = vmatpush.bf16.msra.mxu3 %v1864_v4  ;;  %v1898_v4 = vld [vmem:[%s2453_s4 + $0x148] sm:$0xff] }
 0x127   :  { %381 = vrot.lane.b32.xlu2 %v282_v2, %s1970_s25  ;;  %395 = vrot.lane.b32.xlu0 %v296_v54, %s1971_s26 }
 0x128   :  { %288 = vrot.lane.b32.xlu1 %v283_v5, %s1971_s26 }
 0x12f   :  { %407 = vrot.lane.b32.xlu0 %v311_v57, %s1972_s27 }
 0x130   :  { %341 = vrot.lane.b32.xlu1 %v2055_v23, %s1973_s28 }
 0x137   :  { %369 = vrot.lane.b32.xlu0 %v2079_v41, %s1969_s24 }
 0x138   :  { %409 = vrot.lane.b32.xlu1 %v312_v60, %s1972_s27 }
 0x139   :  { %v276_v7 = vpop.permute.xlu2 %275 }
 0x13f   :  { %421 = vrot.lane.b32.xlu0 %v325_v3, %s1974_s29 }
 0x140   :  { %357 = vrot.lane.b32.xlu1 %v2072_v35, %s1968_s1 }
 0x141   :  { %v263_v6 = vpop.permute.xlu0 %262 }
 0x142   :  { %268 = vst.msk [vmem:[#allocation3 + $0x10] sm:$0xff] %vm266_vm5, %v263_v6  ;;  %v1880_v6 = vld [vmem:[%s2453_s4 + $0xb8] sm:$0xff] }
 0x143   :  { %281 = vst.msk [vmem:[#allocation3 + $0x10] sm:$0xff] %vm279_vm6, %v276_v7  ;;  %1317 = vmatpush.bf16.msrb.mxu1 %v1880_v6  ;;  %v1863_v7 = vld [vmem:[%s2453_s4 + $0x30] sm:$0xff] }
 0x144   :  { %1292 = vmatpush.bf16.msra.mxu3 %v1863_v7  ;;  %v1881_v7 = vld [vmem:[%s2453_s4 + $0xc0] sm:$0xff] }
 0x147   :  { %383 = vrot.lane.b32.xlu0 %v283_v5, %s1970_s25  ;;  %v1872_v5 = vld [vmem:[%s2453_s4 + $0x78] sm:$0xff] }
 0x148   :  { %371 = vrot.lane.b32.xlu1 %v2084_v44, %s1969_s24  ;;  %1304 = vmatpush.bf16.msrb.mxu2 %v1872_v5 }
 0x149   :  { %v274_v8 = vpop.permute.xlu1 %273 }
 0x14a   :  { %280 = vst.msk [vmem:[#allocation3] sm:$0xff] %vm279_vm6, %v274_v8 }
 0x151   :  { %v2126_v9 = vpop.permute.xlu2 %393 }
 0x152   :  { %400 = vst.msk [vmem:[#allocation3 + $0x28] sm:$0xff] %vm307_vm7, %v2126_v9 }
 0x159   :  { %v344_v10 = vpop.permute.xlu2 %343 }
 0x15a   :  { %348 = vst.msk [vmem:[#allocation3 + $0x30] sm:$0xff] %vm240_vm3, %v344_v10  ;;  %v1879_v10 = vld [vmem:[%s2453_s4 + $0xb0] sm:$0xff] }
 0x15b   :  { %352 = vst.msk [vmem:[#allocation3 + $0x30] sm:$0xff] %vm253_vm4, %v2067_v32  ;;  %1318 = vmatpush.bf16.msrb.mxu1 %v1879_v10 }
 0x15f   :  { %1319 = vmatpush.bf16.msrb.mxu1 %v1878_v14 }
 0x169   :  { %v300_v12 = vpop.permute.xlu0 %299 }
 0x16a   :  { %308 = vst.msk [vmem:[#allocation3 + $0x8] sm:$0xff] %vm307_vm7, %v300_v12 }
 0x171   :  { %v302_v17 = vpop.permute.xlu0 %301  ;;  %v420_v18 = vpop.permute.xlu2 %419 }
 0x172   :  { %310 = vst.msk [vmem:[#allocation3 + $0x18] sm:$0xff] %vm307_vm7, %v302_v17 }
 0x179   :  { %v316_v23 = vpop.permute.xlu1 %315  ;;  %v360_v24 = vpop.permute.xlu2 %359 }
 0x17a   :  { %322 = vst.msk [vmem:[#allocation3 + $0x8] sm:$0xff] %vm321_vm8, %v316_v23  ;;  %v1868_v23 = vld [vmem:[%s2453_s4 + $0x58] sm:$0xff] }
 0x17b   :  { %364 = vst.msk [vmem:[#allocation3 + $0x30] sm:$0xff] %vm266_vm5, %v360_v24  ;;  %v1876_v24 = vld [vmem:[%s2453_s4 + $0x98] sm:$0xff] }
 0x181   :  { %v318_v27 = vpop.permute.xlu1 %317  ;;  %v382_v47 = vpop.permute.xlu2 %381 }
 0x182   :  { %323 = vst.msk [vmem:[#allocation3 + $0x18] sm:$0xff] %vm321_vm8, %v318_v27  ;;  %v1859_v27 = vld [vmem:[%s2453_s4 + $0x10] sm:$0xff] }
 0x189   :  { %v329_v30 = vpop.permute.xlu0 %328 }
 0x18a   :  { %335 = vst.msk [vmem:[#allocation3 + $0x8] sm:$0xff] %vm334_vm9, %v329_v30  ;;  %v1867_v30 = vld [vmem:[%s2453_s4 + $0x50] sm:$0xff] }
 0x191   :  { %v287_v31 = vpop.permute.xlu0 %286  ;;  %v428_v35 = vld [vmem:[#allocation3 + $0x8] sm:$0xff] }
 0x192   :  { %293 = vst.msk [vmem:[#allocation3] sm:$0xff] %vm292_vm10, %v287_v31  ;;  %v331_v32 = vpop.permute.xlu1 %330  ;;  %v1875_v31 = vld [vmem:[%s2453_s4 + $0x90] sm:$0xff] }
 0x193   :  { %306 = vst.msk [vmem:[#allocation3] sm:$0xff] %vm305_vm11, %v300_v12  ;;  %v1862_v12 = vld [vmem:[%s2453_s4 + $0x28] sm:$0xff] }
 0x194   :  { %336 = vst.msk [vmem:[#allocation3 + $0x18] sm:$0xff] %vm334_vm9, %v331_v32  ;;  %1293 = vmatpush.bf16.msra.mxu3 %v1862_v12 }
 0x198   :  { %1294 = vmatpush.bf16.msra.mxu3 %v1861_v15 }
 0x199   :  { %v396_v33 = vpop.permute.xlu0 %395 }
 0x19a   :  { %402 = vst.msk [vmem:[#allocation3 + $0x38] sm:$0xff] %vm307_vm7, %v396_v33  ;;  %v289_v34 = vpop.permute.xlu1 %288  ;;  %v427_v40 = vld [vmem:[#allocation3] sm:$0xff] }
 0x19b   :  { %294 = vst.msk [vmem:[#allocation3 + $0x10] sm:$0xff] %vm292_vm10, %v289_v34  ;;  %v430_v36 = vld [vmem:[#allocation3 + $0x18] sm:$0xff] }
 0x19c   :  { %309 = vst.msk [vmem:[#allocation3 + $0x10] sm:$0xff] %vm305_vm11, %v302_v17  ;;  %v436_v37 = vpack.c.bf16 %v430_v36, %v428_v35  ;;  %v1869_v17 = vld [vmem:[%s2453_s4 + $0x60] sm:$0xff]  ;;  %1295 = vmatpush.bf16.msra.mxu3 %v1860_v22  ;;  %v1858_v36 = vld [vmem:[%s2453_s4 + $0x8] sm:$0xff] }
 0x19e   :  { %1534 = vmatmul.msk.bf16.vlgmr.msra.gmra.mxu2 %vm539_vm12, %v436_v37 }
 0x1a0   :  { %1296 = vmatpush.bf16.msra.mxu3 %v1859_v27 }
 0x1a1   :  { %v408_v38 = vpop.permute.xlu0 %407 }
 0x1a2   :  { %413 = vst.msk [vmem:[#allocation3 + $0x28] sm:$0xff] %vm321_vm8, %v408_v38  ;;  %v342_v39 = vpop.permute.xlu1 %341  ;;  %v1866_v38 = vld [vmem:[%s2453_s4 + $0x48] sm:$0xff] }
 0x1a3   :  { %425 = vst.msk [vmem:[#allocation3 + $0x28] sm:$0xff] %vm334_vm9, %v420_v18  ;;  %v429_v41 = vld [vmem:[#allocation3 + $0x10] sm:$0xff]  ;;  %v1877_v18 = vld [vmem:[%s2453_s4 + $0xa0] sm:$0xff] }
 0x1a4   :  { %347 = vst.msk [vmem:[#allocation3 + $0x20] sm:$0xff] %vm240_vm3, %v342_v39  ;;  %v435_v42 = vpack.c.bf16 %v429_v41, %v427_v40  ;;  %1320 = vmatpush.bf16.msrb.mxu1 %v1877_v18  ;;  %v1874_v39 = vld [vmem:[%s2453_s4 + $0x88] sm:$0xff]  ;;  %1297 = vmatpush.bf16.msra.mxu3 %v1858_v36  ;;  %v1912_v18 = vld [vmem:[%s2453_s4 + $0x1b8] sm:$0xff]  ;;  %v1909_v36 = vld [vmem:[%s2453_s4 + $0x1a0] sm:$0xff] }
 0x1a5   :  { %351 = vst.msk [vmem:[#allocation3 + $0x20] sm:$0xff] %vm253_vm4, %v2062_v29 }
 0x1a6   :  { %554 = vmatmul.bf16.vlgmr.msra.gmra.mxu1 %v435_v42  ;;  %v1857_v42 = vld [vmem:[%s2453_s4] sm:$0xff] }
 0x1a8   :  { %1321 = vmatpush.bf16.msrb.mxu1 %v1876_v24  ;;  %1298 = vmatpush.bf16.msra.mxu3 %v1857_v42 }
 0x1a9   :  { %v370_v43 = vpop.permute.xlu0 %369 }
 0x1aa   :  { %v410_v44 = vpop.permute.xlu1 %409  ;;  %v432_v48 = vld [vmem:[#allocation3 + $0x28] sm:$0xff] }
 0x1ab   :  { %414 = vst.msk [vmem:[#allocation3 + $0x38] sm:$0xff] %vm321_vm8, %v410_v44  ;;  %v1865_v44 = vld [vmem:[%s2453_s4 + $0x40] sm:$0xff] }
 0x1ac   :  { %1322 = vmatpush.bf16.msrb.mxu1 %v1875_v31  ;;  %v1927_v31 = vld [vmem:[%s2453_s4 + $0x230] sm:$0xff] }
 0x1b0   :  { %1323 = vmatpush.bf16.msrb.mxu1 %v1874_v39  ;;  %v1908_v39 = vld [vmem:[%s2453_s4 + $0x198] sm:$0xff] }
 0x1b1   :  { %v422_v45 = vpop.permute.xlu0 %421 }
 0x1b2   :  { %426 = vst.msk [vmem:[#allocation3 + $0x38] sm:$0xff] %vm334_vm9, %v422_v45  ;;  %v358_v46 = vpop.permute.xlu1 %357  ;;  %v1873_v45 = vld [vmem:[%s2453_s4 + $0x80] sm:$0xff] }
 0x1b3   :  { %363 = vst.msk [vmem:[#allocation3 + $0x20] sm:$0xff] %vm266_vm5, %v358_v46  ;;  %v1888_v46 = vld [vmem:[%s2453_s4 + $0xf8] sm:$0xff] }
 0x1b4   :  { %375 = vst.msk [vmem:[#allocation3 + $0x20] sm:$0xff] %vm279_vm6, %v370_v43  ;;  %1324 = vmatpush.bf16.msrb.mxu1 %v1873_v45  ;;  %1330 = vmatpush.bf16.msrb.mxu3 %v1888_v46  ;;  %v1924_v46 = vld [vmem:[%s2453_s4 + $0x218] sm:$0xff] }
 0x1b5   :  { %387 = vst.msk [vmem:[#allocation3 + $0x20] sm:$0xff] %vm292_vm10, %v382_v47  ;;  %v1896_v47 = vld [vmem:[%s2453_s4 + $0x138] sm:$0xff] }
 0x1b6   :  { %399 = vst.msk [vmem:[#allocation3 + $0x20] sm:$0xff] %vm305_vm11, %v2126_v9  ;;  %v1871_v9 = vld [vmem:[%s2453_s4 + $0x70] sm:$0xff] }
 0x1b7   :  { %1305 = vmatpush.bf16.msrb.mxu2 %v1871_v9  ;;  %v1897_v9 = vld [vmem:[%s2453_s4 + $0x140] sm:$0xff] }
 0x1b9   :  { %v384_v29 = vpop.permute.xlu0 %383  ;;  %v434_v49 = vld [vmem:[#allocation3 + $0x38] sm:$0xff] }
 0x1ba   :  { %v372_v50 = vpop.permute.xlu1 %371  ;;  %v438_v51 = vpack.c.bf16 %v434_v49, %v432_v48  ;;  %v1887_v48 = vld [vmem:[%s2453_s4 + $0xf0] sm:$0xff] }
 0x1bb   :  { %376 = vst.msk [vmem:[#allocation3 + $0x30] sm:$0xff] %vm279_vm6, %v372_v50  ;;  %1306 = vmatpush.bf16.msrb.mxu2 %v1870_v13  ;;  %v1895_v49 = vld [vmem:[%s2453_s4 + $0x130] sm:$0xff]  ;;  %1331 = vmatpush.bf16.msrb.mxu3 %v1887_v48 }
 0x1bc   :  { %388 = vst.msk [vmem:[#allocation3 + $0x30] sm:$0xff] %vm292_vm10, %v384_v29  ;;  %1535 = vmatmul.msk.bf16.gmra.mxu2 %vm539_vm12, %v438_v51  ;;  %v1904_v29 = vld [vmem:[%s2453_s4 + $0x178] sm:$0xff]  ;;  %v1903_v50 = vld [vmem:[%s2453_s4 + $0x170] sm:$0xff]  ;;  %v1886_v51 = vld [vmem:[%s2453_s4 + $0xe8] sm:$0xff] }
 0x1bd   :  { %401 = vst.msk [vmem:[#allocation3 + $0x30] sm:$0xff] %vm305_vm11, %v396_v33  ;;  %v431_v52 = vld [vmem:[#allocation3 + $0x20] sm:$0xff]  ;;  %1356 = vmatpush.bf16.msra.mxu1 %v1904_v29  ;;  %v1915_v29 = vld [vmem:[%s2453_s4 + $0x1d0] sm:$0xff] }
 0x1be   :  { %v1923_v48 = vld [vmem:[%s2453_s4 + $0x210] sm:$0xff] }
 0x1bf   :  { %1307 = vmatpush.bf16.msrb.mxu2 %v1869_v17  ;;  %1332 = vmatpush.bf16.msrb.mxu3 %v1886_v51  ;;  %v1922_v51 = vld [vmem:[%s2453_s4 + $0x208] sm:$0xff] }
 0x1c1   :  { %1357 = vmatpush.bf16.msra.mxu1 %v1903_v50  ;;  %v1914_v50 = vld [vmem:[%s2453_s4 + $0x1c8] sm:$0xff] }
 0x1c3   :  { %1308 = vmatpush.bf16.msrb.mxu2 %v1868_v23 }
 0x1c4   :  { %v433_v53 = vld [vmem:[#allocation3 + $0x30] sm:$0xff] }
 0x1c5   :  { %v437_v54 = vpack.c.bf16 %v433_v53, %v431_v52  ;;  %v1894_v53 = vld [vmem:[%s2453_s4 + $0x128] sm:$0xff] }
 0x1c7   :  { %559 = vmatmul.bf16.gmra.mxu1 %v437_v54  ;;  %1309 = vmatpush.bf16.msrb.mxu2 %v1867_v30  ;;  %v1902_v54 = vld [vmem:[%s2453_s4 + $0x168] sm:$0xff]  ;;  %v1919_v30 = vld [vmem:[%s2453_s4 + $0x1f0] sm:$0xff] }
 0x1c8   :  { %1358 = vmatpush.bf16.msra.mxu1 %v1902_v54  ;;  %v1921_v54 = vld [vmem:[%s2453_s4 + $0x200] sm:$0xff] }
 0x1cb   :  { %1310 = vmatpush.bf16.msrb.mxu2 %v1866_v38  ;;  %v1925_v38 = vld [vmem:[%s2453_s4 + $0x220] sm:$0xff] }
 0x1cf   :  { %1311 = vmatpush.bf16.msrb.mxu2 %v1865_v44 }
 0x1d3   :  { %1343 = vmatpush.bf16.msra.mxu2 %v1896_v47  ;;  %v1907_v47 = vld [vmem:[%s2453_s4 + $0x190] sm:$0xff] }
 0x1d7   :  { %1344 = vmatpush.bf16.msra.mxu2 %v1895_v49  ;;  %v1906_v49 = vld [vmem:[%s2453_s4 + $0x188] sm:$0xff] }
 0x1db   :  { %1345 = vmatpush.bf16.msra.mxu2 %v1894_v53  ;;  %v1913_v53 = vld [vmem:[%s2453_s4 + $0x1c0] sm:$0xff] }
 0x221   :  { %v574_v56 = vpop.f32.mrf.mxu2 }
 0x223   :  { %v555_v57 = vpop.f32.mrf.mxu1 }
 0x224   :  { %v556_v58 = vadd.f32 %v2201_v55, %v555_v57  ;;  %v1893_v57 = vld [vmem:[%s2453_s4 + $0x120] sm:$0xff] }
 0x225   :  { %1346 = vmatpush.bf16.msra.mxu2 %v1893_v57 }
 0x226   :  { %v575_v59 = vadd.f32 %v574_v56, %v556_v58  ;;  %v1885_v56 = vld [vmem:[%s2453_s4 + $0xe0] sm:$0xff] }
 0x227   :  { %v1901_v58 = vld [vmem:[%s2453_s4 + $0x160] sm:$0xff]  ;;  %1333 = vmatpush.bf16.msrb.mxu3 %v1885_v56 }
 0x228   :  { %v2204_v60 = vmax.f32 %v575_v59, 0.0  ;;  %v1884_v59 = vld [vmem:[%s2453_s4 + $0xd8] sm:$0xff]  ;;  %1359 = vmatpush.bf16.msra.mxu1 %v1901_v58 }
 0x229   :  { %v576_v0 = vpop.f32.mrf.mxu2 }
 0x22a   :  { %588 = vst [vmem:[#allocation4] sm:$0x1] %v2204_v60  ;;  %v1536_v61 = vrot.slane %v2204_v60, 9 }
 0x22b   :  { %594 = vst.sshfl [vmem:[#allocation1] sm:$0xff pattern:$0x73625140] %v2204_v60  ;;  %v557_v62 = vpop.f32.mrf.mxu1  ;;  %1334 = vmatpush.bf16.msrb.mxu3 %v1884_v59 }
 0x22c   :  { %593 = vst [vmem:[#allocation4 + $0x2] sm:$0x1] %v1536_v61  ;;  %v558_v63 = vadd.f32 %v2201_v55, %v557_v62  ;;  %v1900_v61 = vld [vmem:[%s2453_s4 + $0x158] sm:$0xff] }
 0x22d   :  { %1360 = vmatpush.bf16.msra.mxu1 %v1900_v61 }
 0x22e   :  { %v577_v1 = vadd.f32 %v576_v0, %v558_v63  ;;  %v1883_v63 = vld [vmem:[%s2453_s4 + $0xd0] sm:$0xff] }
 0x22f   :  { %v1891_v0 = vld [vmem:[%s2453_s4 + $0x110] sm:$0xff]  ;;  %1335 = vmatpush.bf16.msrb.mxu3 %v1883_v63 }
 0x230   :  { %v585_v2 = vmax.f32 %v577_v1, 0.0  ;;  %v1899_v1 = vld [vmem:[%s2453_s4 + $0x150] sm:$0xff] }
 0x231   :  { %1361 = vmatpush.bf16.msra.mxu1 %v1899_v1 }
 0x232   :  { %v596_v3 = vld [vmem:[#allocation1 + $0x1] ss:$4 sm:$0xff]  ;;  %630 = vst [vmem:[#allocation4 + $0x10] sm:$0x1] %v585_v2 }
 0x233   :  { %599 = vst.sshfl [vmem:[#allocation1] sm:$0xff pattern:$0x73625140] %v2204_v60  ;;  %v1882_v2 = vld [vmem:[%s2453_s4 + $0xc8] sm:$0xff] }
 0x234   :  { %598 = vst [vmem:[#allocation4 + $0x4] sm:$0x1] %v596_v3  ;;  %v1890_v3 = vld [vmem:[%s2453_s4 + $0x108] sm:$0xff]  ;;  %1336 = vmatpush.bf16.msrb.mxu3 %v1882_v2 }
 0x235   :  { %1362 = vmatpush.bf16.msra.mxu1 %v1898_v4 }
 0x238   :  { %1337 = vmatpush.bf16.msrb.mxu3 %v1881_v7 }
 0x239   :  { %1363 = vmatpush.bf16.msra.mxu1 %v1897_v9 }
 0x23a   :  { %v601_v8 = vld [vmem:[#allocation1 + $0x1] ss:$4 sm:$0xff] }
 0x23b   :  { %606 = vst.sshfl [vmem:[#allocation1] sm:$0xff pattern:$0x73625140] %v2204_v60  ;;  %v1537_v11 = vrot.slane %v601_v8, 9  ;;  %v1889_v8 = vld [vmem:[%s2453_s4 + $0x100] sm:$0xff] }
 0x23d   :  { %605 = vst [vmem:[#allocation4 + $0x6] sm:$0x1] %v1537_v11 }
 0x23f   :  { %v579_v19 = vpop.f32.mrf.mxu2 }
 0x242   :  { %v608_v16 = vld [vmem:[#allocation1 + $0x2] ss:$4 sm:$0xff] }
 0x243   :  { %611 = vst.sshfl [vmem:[#allocation1] sm:$0xff pattern:$0x73625140] %v2204_v60 }
 0x244   :  { %610 = vst [vmem:[#allocation4 + $0x8] sm:$0x1] %v608_v16  ;;  %v560_v20 = vpop.f32.mrf.mxu1 }
 0x245   :  { %v561_v21 = vadd.f32 %v2201_v55, %v560_v20 }
 0x247   :  { %v580_v25 = vadd.f32 %v579_v19, %v561_v21  ;;  %v581_v37 = vpop.f32.mrf.mxu2  ;;  %v1920_v19 = vld [vmem:[%s2453_s4 + $0x1f8] sm:$0xff] }
 0x249   :  { %v2259_v26 = vmax.f32 %v580_v25, 0.0 }
 0x24a   :  { %v613_v28 = vld [vmem:[#allocation1 + $0x2] ss:$4 sm:$0xff] }
 0x24b   :  { %618 = vst.sshfl [vmem:[#allocation1] sm:$0xff pattern:$0x73625140] %v2204_v60  ;;  %v1540_v32 = vrot.slane %v2259_v26, 9  ;;  %v1538_v33 = vrot.slane %v613_v28, 9  ;;  %v1911_v28 = vld [vmem:[%s2453_s4 + $0x1b0] sm:$0xff] }
 0x24c   :  { %631 = vst [vmem:[#allocation4 + $0x1] sm:$0x1] %v2259_v26  ;;  %v562_v34 = vpop.f32.mrf.mxu1 }
 0x24d   :  { %636 = vst [vmem:[#allocation4 + $0x3] sm:$0x1] %v1540_v32  ;;  %v563_v35 = vadd.f32 %v2201_v55, %v562_v34  ;;  %v1910_v32 = vld [vmem:[%s2453_s4 + $0x1a8] sm:$0xff] }
 0x24e   :  { %617 = vst [vmem:[#allocation4 + $0xa] sm:$0x1] %v1538_v33  ;;  %v1918_v33 = vld [vmem:[%s2453_s4 + $0x1e8] sm:$0xff] }
 0x24f   :  { %v582_v40 = vadd.f32 %v581_v37, %v563_v35  ;;  %v1926_v35 = vld [vmem:[%s2453_s4 + $0x228] sm:$0xff]  ;;  %v1917_v37 = vld [vmem:[%s2453_s4 + $0x1e0] sm:$0xff] }
 0x251   :  { %v587_v41 = vmax.f32 %v582_v40, 0.0  ;;  %v1916_v40 = vld [vmem:[%s2453_s4 + $0x1d8] sm:$0xff] }
 0x252   :  { %v620_v43 = vld [vmem:[#allocation1 + $0x3] ss:$4 sm:$0xff] }
 0x253   :  { %622 = vst [vmem:[#allocation4 + $0xc] sm:$0x1] %v620_v43 }
 0x254   :  { %623 = vst.sshfl [vmem:[#allocation1] sm:$0xff pattern:$0x73625140] %v2204_v60  ;;  %v1892_v60 = vld [vmem:[%s2453_s4 + $0x118] sm:$0xff] }
 0x255   :  { %673 = vst [vmem:[#allocation4 + $0x11] sm:$0x1] %v587_v41  ;;  %1347 = vmatpush.bf16.msra.mxu2 %v1892_v60 }
 0x259   :  { %1348 = vmatpush.bf16.msra.mxu2 %v1891_v0 }
 0x25b   :  { %v625_v52 = vld [vmem:[#allocation1 + $0x3] ss:$4 sm:$0xff] }
 0x25c   :  { %v1539_v55 = vrot.slane %v625_v52, 9  ;;  %637 = vst.sshfl [vmem:[#allocation1] sm:$0xff pattern:$0x73625140] %v2259_v26  ;;  %v676_v20 = vld [vmem:[#allocation4 + $0x10] sm:$0x3] }
 0x25d   :  { %1349 = vmatpush.bf16.msra.mxu2 %v1890_v3  ;;  %v1905_v52 = vld [vmem:[%s2453_s4 + $0x180] sm:$0xff] }
 0x25e   :  { %629 = vst [vmem:[#allocation4 + $0xe] sm:$0x1] %v1539_v55  ;;  %v1940_v3 = vld [vmem:[%s2454_s5] ss:$0 sm:$0xff] }
 0x261   :  { %1350 = vmatpush.bf16.msra.mxu2 %v1889_v8 }
 0x263   :  { %v639_v62 = vld [vmem:[#allocation1 + $0x1] ss:$4 sm:$0xff] }
 0x264   :  { %642 = vst.sshfl [vmem:[#allocation1] sm:$0xff pattern:$0x73625140] %v2259_v26 }
 0x265   :  { %641 = vst [vmem:[#allocation4 + $0x5] sm:$0x1] %v639_v62 }
 0x26b   :  { %v644_v5 = vld [vmem:[#allocation1 + $0x1] ss:$4 sm:$0xff] }
 0x26c   :  { %649 = vst.sshfl [vmem:[#allocation1] sm:$0xff pattern:$0x73625140] %v2259_v26  ;;  %v1541_v6 = vrot.slane %v644_v5, 9 }
 0x26e   :  { %648 = vst [vmem:[#allocation4 + $0x7] sm:$0x1] %v1541_v6 }
 0x273   :  { %v651_v10 = vld [vmem:[#allocation1 + $0x2] ss:$4 sm:$0xff] }
 0x274   :  { %654 = vst.sshfl [vmem:[#allocation1] sm:$0xff pattern:$0x73625140] %v2259_v26 }
 0x275   :  { %653 = vst [vmem:[#allocation4 + $0x9] sm:$0x1] %v651_v10  ;;  %v674_v14 = vld [vmem:[#allocation4] sm:$0xff] }
 0x27b   :  { %v656_v11 = vld [vmem:[#allocation1 + $0x2] ss:$4 sm:$0xff] }
 0x27c   :  { %661 = vst.sshfl [vmem:[#allocation1] sm:$0xff pattern:$0x73625140] %v2259_v26  ;;  %v1542_v12 = vrot.slane %v656_v11, 9 }
 0x27e   :  { %660 = vst [vmem:[#allocation4 + $0xb] sm:$0x1] %v1542_v12 }
 0x283   :  { %v663_v13 = vld [vmem:[#allocation1 + $0x3] ss:$4 sm:$0xff] }
 0x284   :  { %666 = vst.sshfl [vmem:[#allocation1] sm:$0xff pattern:$0x73625140] %v2259_v26  ;;  %v1928_v26 = vld [vmem:[%s2453_s4 + $0x238] sm:$0xff] }
 0x285   :  { %680 = vst [vmem:[#allocation1] ss:$4 sm:$0xff] %v674_v14 }
 0x286   :  { %665 = vst [vmem:[#allocation4 + $0xd] sm:$0x1] %v663_v13 }
 0x28b   :  { %v668_v15 = vld [vmem:[#allocation1 + $0x3] ss:$4 sm:$0xff] }
 0x28c   :  { %v1543_v16 = vrot.slane %v668_v15, 9  ;;  %v683_v17 = vld.sshfl [vmem:[#allocation1] sm:$0xff pattern:$0x73625140] }
 0x28d   :  { %v702_v21 = vpack.c.bf16 %v683_v17, %v683_v17  ;;  %v684_v22 = vld.sshfl [vmem:[#allocation1 + $0x8] sm:$0xff pattern:$0x73625140]  ;;  %v685_v23 = vld.sshfl [vmem:[#allocation1 + $0x10] sm:$0xff pattern:$0x73625140] }
 0x28e   :  { %672 = vst [vmem:[#allocation4 + $0xf] sm:$0x1] %v1543_v16  ;;  %v703_v24 = vpack.c.bf16 %v684_v22, %v684_v22  ;;  %v704_v25 = vpack.c.bf16 %v685_v23, %v685_v23  ;;  %v686_v27 = vld.sshfl [vmem:[#allocation1 + $0x18] sm:$0xff pattern:$0x73625140] }
 0x28f   :  { %1299 = vmatmul.bf16.vlgmr.msra.gmra.mxu3 %v702_v21  ;;  %691 = vst [vmem:[#allocation1] ss:$4 sm:$0xff] %v676_v20  ;;  %v705_v41 = vpack.c.bf16 %v686_v27, %v686_v27 }
 0x290   :  { %1312 = vmatmul.bf16.vlgmr.msrb.gmra.mxu2 %v703_v24  ;;  %1325 = vmatmul.bf16.vlgmr.msrb.gmra.mxu1 %v704_v25 }
 0x291   :  { %1369 = vmatpush.bf16.msra.mxu3 %v1912_v18  ;;  %1382 = vmatpush.bf16.msrb.mxu2 %v1920_v19 }
 0x292   :  { %1395 = vmatpush.bf16.msrb.mxu1 %v1928_v26 }
 0x295   :  { %1370 = vmatpush.bf16.msra.mxu3 %v1911_v28  ;;  %1383 = vmatpush.bf16.msrb.mxu2 %v1919_v30  ;;  %v675_v34 = vld [vmem:[#allocation4 + $0x8] sm:$0xff] }
 0x296   :  { %1396 = vmatpush.bf16.msrb.mxu1 %v1927_v31  ;;  %682 = vst [vmem:[#allocation1 + $0x20] ss:$4 sm:$0xff] %v675_v34  ;;  %v692_v57 = vld.sshfl [vmem:[#allocation1] sm:$0xff pattern:$0x73625140] }
 0x297   :  { %v710_v60 = vpack.c.bf16 %v692_v57, %v692_v57 }
 0x299   :  { %1371 = vmatpush.bf16.msra.mxu3 %v1910_v32  ;;  %1384 = vmatpush.bf16.msrb.mxu2 %v1918_v33 }
 0x29a   :  { %1397 = vmatpush.bf16.msrb.mxu1 %v1926_v35 }
 0x29d   :  { %1372 = vmatpush.bf16.msra.mxu3 %v1909_v36  ;;  %1385 = vmatpush.bf16.msrb.mxu2 %v1917_v37  ;;  %v687_v42 = vld.sshfl [vmem:[#allocation1 + $0x20] sm:$0xff pattern:$0x73625140]  ;;  %v688_v43 = vld.sshfl [vmem:[#allocation1 + $0x28] sm:$0xff pattern:$0x73625140] }
 0x29e   :  { %1398 = vmatpush.bf16.msrb.mxu1 %v1925_v38  ;;  %v706_v44 = vpack.c.bf16 %v687_v42, %v687_v42  ;;  %v707_v45 = vpack.c.bf16 %v688_v43, %v688_v43  ;;  %v689_v55 = vld.sshfl [vmem:[#allocation1 + $0x30] sm:$0xff pattern:$0x73625140]  ;;  %v690_v56 = vld.sshfl [vmem:[#allocation1 + $0x38] sm:$0xff pattern:$0x73625140] }
 0x29f   :  { %1338 = vmatmul.bf16.vlgmr.msrb.gmra.mxu3 %v705_v41  ;;  %v708_v58 = vpack.c.bf16 %v689_v55, %v689_v55  ;;  %v709_v59 = vpack.c.bf16 %v690_v56, %v690_v56 }
 0x2a0   :  { %1351 = vmatmul.bf16.vlgmr.msra.gmra.mxu2 %v706_v44  ;;  %1364 = vmatmul.bf16.vlgmr.msra.gmra.mxu1 %v707_v45 }
 0x2a1   :  { %1373 = vmatpush.bf16.msra.mxu3 %v1908_v39  ;;  %1386 = vmatpush.bf16.msrb.mxu2 %v1916_v40 }
 0x2a2   :  { %1399 = vmatpush.bf16.msrb.mxu1 %v1924_v46 }
 0x2a5   :  { %1374 = vmatpush.bf16.msra.mxu3 %v1907_v47  ;;  %1387 = vmatpush.bf16.msrb.mxu2 %v1915_v29 }
 0x2a6   :  { %1400 = vmatpush.bf16.msrb.mxu1 %v1923_v48 }
 0x2a9   :  { %1375 = vmatpush.bf16.msra.mxu3 %v1906_v49  ;;  %1388 = vmatpush.bf16.msrb.mxu2 %v1914_v50 }
 0x2aa   :  { %1401 = vmatpush.bf16.msrb.mxu1 %v1922_v51 }
 0x2ad   :  { %1376 = vmatpush.bf16.msra.mxu3 %v1905_v52  ;;  %1389 = vmatpush.bf16.msrb.mxu2 %v1913_v53 }
 0x2ae   :  { %1402 = vmatpush.bf16.msrb.mxu1 %v1921_v54 }
 0x2b0   :  { %1377 = vmatmul.bf16.vlgmr.msra.gmra.mxu3 %v708_v58  ;;  %1390 = vmatmul.bf16.vlgmr.msrb.gmra.mxu2 %v709_v59 }
 0x2b1   :  { %1403 = vmatmul.bf16.vlgmr.msrb.gmra.mxu1 %v710_v60 }
 0x30d   :  { %v1326_v61 = vpop.f32.mrf.mxu1 }
 0x312   :  { %v1300_v62 = vpop.f32.mrf.mxu3 }
 0x313   :  { %v1313_v63 = vpop.f32.mrf.mxu2  ;;  %v1301_v5 = vadd.f32 %v1940_v3, %v1300_v62 }
 0x315   :  { %v1328_v0 = vpop.f32.mrf.mxu1  ;;  %v1314_v8 = vadd.f32 %v1313_v63, %v1301_v5 }
 0x317   :  { %v1327_v10 = vadd.f32 %v1326_v61, %v1314_v8 }
 0x31a   :  { %v1302_v1 = vpop.f32.mrf.mxu3 }
 0x31b   :  { %v1315_v2 = vpop.f32.mrf.mxu2 }
 0x31d   :  { %v1365_v4 = vpop.f32.mrf.mxu1 }
 0x322   :  { %v1339_v6 = vpop.f32.mrf.mxu3 }
 0x323   :  { %v1352_v7 = vpop.f32.mrf.mxu2  ;;  %v1340_v11 = vadd.f32 %v1339_v6, %v1327_v10 }
 0x325   :  { %v1367_v9 = vpop.f32.mrf.mxu1  ;;  %v1353_v14 = vadd.f32 %v1352_v7, %v1340_v11 }
 0x327   :  { %v1366_v16 = vadd.f32 %v1365_v4, %v1353_v14 }
 0x32a   :  { %v1341_v12 = vpop.f32.mrf.mxu3 }
 0x32b   :  { %v1354_v13 = vpop.f32.mrf.mxu2 }
 0x32e   :  { %v1404_v15 = vpop.f32.mrf.mxu1 }
 0x333   :  { %v1378_v17 = vpop.f32.mrf.mxu3  ;;  %v1391_v18 = vpop.f32.mrf.mxu2 }
 0x334   :  { %v1379_v19 = vadd.f32 %v1378_v17, %v1366_v16 }
 0x336   :  { %v1392_v20 = vadd.f32 %v1391_v18, %v1379_v19  ;;  %v1406_v21 = vpop.f32.mrf.mxu1 }
 0x338   :  { %v1405_v22 = vadd.f32 %v1404_v15, %v1392_v20 }
 0x33a   :  { %1409 = vst.msk [vmem:[#allocation5] sm:$0x3] %vm1408_vm13, %v1405_v22 }
 0x33b   :  { %v1380_v23 = vpop.f32.mrf.mxu3  ;;  %v1393_v24 = vpop.f32.mrf.mxu2  ;;  %1420 = dma.vmem_to_hbm [thread:$0]  %s1416_s11, 32, %s1418_s13, [#allocation6]  }
 0x33c   :  { %1965 = dma.done.wait [#allocation6], 32  }
 0x33d   :  { %1966 = vsyncadd [#allocation6], 4294967264 }
 0x33e   :  { %1425 = vsyncpa [#allocation6], 1 }

</bundles_post_ra>
